<compile_context>
chip_gen: v7x
topology: tpu7x:2x2x1
jax: 0.10.0
libtpu: 0.0.40
codegen_flags: <defaults>
</compile_context>

<pallas_src>
import jax
import jax.numpy as jnp
from jax.experimental import pallas as pl
from jax.experimental.pallas import tpu as pltpu


# ----------------------------------------------------------------------------
# 1) Standalone attribute-vector kernel (kept only for API parity / testing).
#    Pure scalar path: one SMEM load, one scalar sub, two SMEM stores.
# ----------------------------------------------------------------------------
def att_encoder_kernel(a1_ref, out_ref):
    # a1_ref:  SMEM scalar parameter, shape (1,)
    # out_ref: SMEM output, shape (2,)  ->  [1 - a1, a1]
    a1 = a1_ref[0]
    out_ref[0] = 1.0 - a1
    out_ref[1] = a1


def att_encoder_forward_pallas(a1_scalar):
    """Pallas equivalent of AttEncoderModule.forward(): returns (1, 2) f32."""
    a1 = jnp.asarray(a1_scalar, dtype=jnp.float32).reshape((1,))
    row = pl.pallas_call(
        att_encoder_kernel,
        out_shape=jax.ShapeDtypeStruct((2,), jnp.float32),
        in_specs=[pl.BlockSpec(memory_space=pltpu.SMEM)],
        out_specs=pl.BlockSpec(memory_space=pltpu.SMEM),
    )(a1)
    # Metadata-only reshape outside the kernel (matches .unsqueeze(0)).
    return row.reshape((1, 2))


def att_encoder_forward_jax(a1_scalar):
    """Recommended production path: plain JAX; XLA fuses/const-folds it into
    the consumer so the whole op is effectively zero-cost."""
    a1 = jnp.asarray(a1_scalar, dtype=jnp.float32)
    return jnp.stack([1.0 - a1, a1]).reshape((1, 2))


# ----------------------------------------------------------------------------
# 2) Recommended fusion pattern for a downstream Pallas consumer:
#    never materialize the (1,2) row; pass a1 as an SMEM scalar and express
#    [[1-a1, a1]] @ [w0; w1]  as a VPU lerp  w0 + a1*(w1 - w0)
#    over lane-dense (8,128)-aligned tiles (no K=2 MXU matmul).
# ----------------------------------------------------------------------------
def attribute_lerp_kernel(a1_ref, w0_ref, w1_ref, out_ref):
    # a1_ref: SMEM scalar (1,); w0/w1/out: VMEM (R, C) f32 tiles.
    a1 = a1_ref[0]
    w0 = w0_ref[...]
    w1 = w1_ref[...]
    out_ref[...] = w0 + a1 * (w1 - w0)          # == (1-a1)*w0 + a1*w1


def attribute_blend_pallas(a1_scalar, w0, w1):
    """Demonstrates consuming the attribute inside a Pallas kernel without
    materializing the (1,2) attribute row (VPU lerp, memory-bound on w reads)."""
    a1 = jnp.asarray(a1_scalar, dtype=jnp.float32).reshape((1,))
    return pl.pallas_call(
        attribute_lerp_kernel,
        out_shape=jax.ShapeDtypeStruct(w0.shape, jnp.float32),
        in_specs=[
            pl.BlockSpec(memory_space=pltpu.SMEM),   # a1 scalar
            pl.BlockSpec(memory_space=pltpu.VMEM),   # w0 tile (lane-dense)
            pl.BlockSpec(memory_space=pltpu.VMEM),   # w1 tile (lane-dense)
        ],
        out_specs=pl.BlockSpec(memory_space=pltpu.VMEM),
    )(a1, w0, w1)


# TODO(synk): Attacker.forward also runs AutoEncoder.encode/decode and a
# Classifier on the reconstruction; their definitions are not part of the
# provided spec, so only the AttEncoderModule attribute-vector construction
# (and the recommended fused-consumption pattern) is implemented here.


if __name__ == "__main__":
    # Deterministic "parameter" init (alpha1 scalar), mimicking __init__(alpha1).
    key = jax.random.PRNGKey(0)
    k_a, k_w0, k_w1 = jax.random.split(key, 3)
    alpha1 = jax.random.uniform(k_a, (), dtype=jnp.float32)  # scalar parameter a1

    # --- standalone attribute-vector kernel (parity/testing form) ---
    out = att_encoder_forward_pallas(alpha1)
    out = jax.block_until_ready(out)

    a1_val = float(alpha1)
    ref = jnp.array([[1.0 - a1_val, a1_val]], dtype=jnp.float32)
    ref_jax = att_encoder_forward_jax(alpha1)

    assert out.shape == (1, 2), out.shape
    assert out.dtype == jnp.float32, out.dtype
    assert jnp.allclose(out, ref, atol=1e-6), (out, ref)
    assert jnp.allclose(out, ref_jax, atol=1e-6), (out, ref_jax)

    # --- fused-consumption demo: [[1-a1, a1]] @ [w0; w1] as a VPU lerp ---
    R, C = 8, 128  # one f32 vreg tile, lane-dense and (8,128)-aligned
    w0 = jax.random.normal(k_w0, (R, C), dtype=jnp.float32)
    w1 = jax.random.normal(k_w1, (R, C), dtype=jnp.float32)

    blended = attribute_blend_pallas(alpha1, w0, w1)
    blended = jax.block_until_ready(blended)

    # Reference: the matmul a downstream decoder would otherwise do with the
    # materialized (1,2) attribute row against the stacked weights.
    stacked = jnp.stack([w0.reshape(-1), w1.reshape(-1)], axis=0)   # (2, R*C)
    blended_ref = (ref_jax @ stacked).reshape(R, C)

    assert blended.shape == (R, C), blended.shape
    assert jnp.allclose(blended, blended_ref, atol=1e-5), (
        float(jnp.max(jnp.abs(blended - blended_ref))))

    print("KERNEL_OK")
</pallas_src>

<mosaic_0001>
module attributes {stable_mosaic.version = 11 : i64} {
  func.func @att_encoder_kernel(%arg0: memref<1xf32, #tpu.memory_space<smem>>, %arg1: memref<2xf32, #tpu.memory_space<smem>>) attributes {dimension_semantics = [], scalar_prefetch = 0 : i64, scratch_operands = 0 : i64, tpu.core_type = #tpu.core_type<tc>} {
    %c0 = arith.constant 0 : index
    %0 = memref.load %arg0[%c0] : memref<1xf32, #tpu.memory_space<smem>>
    %cst = arith.constant 1.000000e+00 : f32
    %1 = arith.subf %cst, %0 : f32
    %c0_0 = arith.constant 0 : index
    %2 = memref.load %arg1[%c0_0] : memref<2xf32, #tpu.memory_space<smem>>
    memref.store %1, %arg1[%c0_0] : memref<2xf32, #tpu.memory_space<smem>>
    %c1 = arith.constant 1 : index
    %3 = memref.load %arg1[%c1] : memref<2xf32, #tpu.memory_space<smem>>
    memref.store %0, %arg1[%c1] : memref<2xf32, #tpu.memory_space<smem>>
    return
  }
}

</mosaic_0001>

<bundles_post_ra>
// kernel: tpu_custom_call.1
= control target key start
LH: loop header
LB: loop body
LE: loop exit
PB: predicated region body
PF: predicated region fallthrough
CT: control target
= control target key end

     0   :  { %7 = vsyncpa [#allocation4], 0  ;;  %s71_s0 = inlined_call_operand.<no memory space> [shape: f32[1], index: 0, kind: input, shape index: {}]   ;;  %s72_s1 = inlined_call_operand.hbm [shape: f32[2], index: 1, kind: output, shape index: {}]  }
   0x1   :  { %s11_s8 = ssub.f32 1.0, %s71_s0  ;;  %s30_s13 = scalar_lea.hbm %s72_s1, 16 }
   0x2   :  { %15 = sst [smem:[#allocation3 + $0x1]] %s71_s0  ;;  %p31_p0 = scmp.ne.s32.totalorder %s72_s1, %s30_s13 }
   0x3   :  { %13 = sst [smem:[#allocation3]] %s11_s8  ;;  %p34_p1 = scmp.lt.u32.totalorder %s30_s13, %s72_s1 }
   0x5   :  { %p36_p2 = pnand %p34_p1, %p31_p0 }
   0x7   :  { %39 = shalt.err (!%p36_p2)
}
   0x8   :  { %s42_s18 = smov [#allocation3]  }
   0x9   :  { %23 = dma.smem_to_hbm %s42_s18, 16, %s72_s1, [#allocation4]  }
   0xa   :  { %40 = dma.done.wait [#allocation4], 16  }
   0xb   :  { %41 = vsyncadd [#allocation4], 4294967280 }
   0xc   :  { %27 = sfence }
   0xd   :  { %28 = vsyncpa [#allocation4], 1 }

</bundles_post_ra>
